<compile_context>
chip_gen: v6e
topology: v6e:2x2x1
jax: 0.10.0
libtpu: 0.0.40
codegen_flags: <defaults>
</compile_context>

<pallas_src>
import functools
import math

import jax
import jax.numpy as jnp
from jax.experimental import pallas as pl
from jax.experimental.pallas import tpu as pltpu


def build_pe_table(d_model: int, max_len: int) -> jnp.ndarray:
    """Deterministic sin/cos positional-encoding table, shape (max_len, d_model)."""
    position = jnp.arange(0, max_len, dtype=jnp.float32)[:, None]             # (L, 1)
    div_term = jnp.exp(
        jnp.arange(0, d_model, 2, dtype=jnp.float32) * -(math.log(10000.0) / d_model)
    )                                                                          # (D/2,)
    angles = position * div_term                                               # (L, D/2)
    # interleave sin (even cols) / cos (odd cols) == pe[:,0::2]=sin, pe[:,1::2]=cos
    pe = jnp.stack([jnp.sin(angles), jnp.cos(angles)], axis=-1).reshape(max_len, d_model)
    return pe.astype(jnp.float32)


def _pe_add_dropout_kernel(seed_ref, x_ref, pe_ref, o_ref, *,
                           p: float, training: bool,
                           cols_per_tile: int, total_cols: int):
    # x_ref/o_ref: (B, TC) tile of the flattened (B, S*D) activations
    # pe_ref:      (1, TC) matching tile of the flattened PE slab (shared over batch)
    y = x_ref[...] + pe_ref[...]          # broadcast over batch, in input dtype

    if training and 0.0 < p < 1.0:
        # Counter-based PRNG: hash(global element index, seed) -> keep mask.
        # Portable (pure VPU int ops), deterministic, and independent of grid
        # order / tiling, so "parallel" dimension semantics are safe.
        seed_u = seed_ref[0].astype(jnp.uint32)
        b_idx = jax.lax.broadcasted_iota(jnp.uint32, y.shape, 0)
        c_idx = jax.lax.broadcasted_iota(jnp.uint32, y.shape, 1)
        col = c_idx + jnp.uint32(cols_per_tile) * pl.program_id(0).astype(jnp.uint32)
        idx = b_idx * jnp.uint32(total_cols % (1 << 32)) + col
        # murmur3 fmix32 over (idx, seed); uint32 arithmetic wraps as intended.
        h = idx ^ (seed_u * jnp.uint32(0x9E3779B1))
        h = h ^ (h >> 16)
        h = h * jnp.uint32(0x85EBCA6B)
        h = h ^ (h >> 13)
        h = h * jnp.uint32(0xC2B2AE35)
        h = h ^ (h >> 16)
        threshold = min(int(round(p * 4294967296.0)), 4294967295)  # clamp (p==1 safe)
        keep = h >= jnp.uint32(threshold)                          # P(keep) = 1 - p
        scale = jnp.asarray(1.0 / (1.0 - p), dtype=y.dtype)
        y = jnp.where(keep, y * scale, jnp.zeros_like(y))
    elif training and p >= 1.0:
        y = jnp.zeros_like(y)

    o_ref[...] = y.astype(o_ref.dtype)


def _choose_cols_per_tile(flat_len: int, batch: int, itemsize: int,
                          target_block_bytes: int = 2 * 1024 * 1024) -> int:
    """Largest multiple-of-128 tile width that divides flat_len and keeps one
    (batch, tile) block near target_block_bytes.  Falls back to a single
    full-width tile when flat_len is not 128-aligned (small / odd shapes)."""
    if flat_len % 128 != 0:
        return flat_len
    max_cols = max(128, (target_block_bytes // max(batch * itemsize, 1)) // 128 * 128)
    if flat_len <= max_cols:
        return flat_len
    best = 128
    c = 256
    while c <= max_cols:
        if flat_len % c == 0:
            best = c
        c += 128
    return best


def positional_encoding_forward(x, pe_table, start_idx=0, *, p=0.0,
                                training=False, seed=0):
    """dropout(x + pe[start_idx:start_idx + S]); x: (B, S, D) array."""
    B, S, D = x.shape
    # Parameter-setup glue (outside the kernel): slice the table, match dtype.
    pe_slice = jax.lax.dynamic_slice(pe_table, (start_idx, 0), (S, D)).astype(x.dtype)

    # Lane-dense view: (B, S, D) -> (B, S*D); pe -> (1, S*D).  Pure layout plumbing.
    L = S * D
    x2 = x.reshape(B, L)
    pe2 = pe_slice.reshape(1, L)

    tc = _choose_cols_per_tile(L, B, x.dtype.itemsize)
    num_tiles = L // tc
    seed_arr = jnp.array([seed], dtype=jnp.int32)

    kernel = functools.partial(
        _pe_add_dropout_kernel,
        p=float(p), training=bool(training), cols_per_tile=tc, total_cols=L)

    out2 = pl.pallas_call(
        kernel,
        out_shape=jax.ShapeDtypeStruct((B, L), x.dtype),
        grid_spec=pltpu.PrefetchScalarGridSpec(
            num_scalar_prefetch=1,              # seed lands in SMEM
            grid=(num_tiles,),                  # tiles along the flattened S*D axis
            in_specs=[
                pl.BlockSpec((B, tc), lambda t, seed: (0, t)),   # x tile (whole batch)
                pl.BlockSpec((1, tc), lambda t, seed: (0, t)),   # pe tile (shared)
            ],
            out_specs=pl.BlockSpec((B, tc), lambda t, seed: (0, t)),
        ),
        compiler_params=pltpu.CompilerParams(
            # hash-based mask is order independent -> safe to shard across TCs
            dimension_semantics=("parallel",),
        ),
    )(seed_arr, x2, pe2)

    return out2.reshape(B, S, D)


if __name__ == "__main__":
    # Small, deterministic example shapes
    B, S, D = 2, 8, 32
    MAX_LEN = 64            # stand-in for max_len=50000 (same construction)
    DROPOUT_P = 0.1
    START_IDX = 3

    key = jax.random.PRNGKey(0)
    x = jax.random.normal(key, (B, S, D), dtype=jnp.float32)

    pe_table = build_pe_table(D, MAX_LEN)

    # Eval mode (dropout = identity): check against a pure-JAX reference.
    out_eval = positional_encoding_forward(
        x, pe_table, start_idx=START_IDX, p=DROPOUT_P, training=False
    )
    out_eval = jax.block_until_ready(out_eval)
    ref = x + pe_table[START_IDX:START_IDX + S][None]
    assert jnp.allclose(out_eval, ref, atol=1e-6, rtol=1e-6), "mismatch vs reference"

    # Training mode: exercise the in-kernel dropout path (deterministic seeded mask).
    out_train = positional_encoding_forward(
        x, pe_table, start_idx=START_IDX, p=DROPOUT_P, training=True, seed=1234
    )
    out_train = jax.block_until_ready(out_train)
    assert out_train.shape == (B, S, D)
    # Every element is either dropped (exactly 0) or the scaled reference value.
    scaled_ref = ref / (1.0 - DROPOUT_P)
    dropped = (out_train == 0.0)
    kept_ok = jnp.isclose(out_train, scaled_ref, atol=1e-5, rtol=1e-5)
    assert bool(jnp.all(dropped | kept_ok)), "dropout output is not {0, scaled x+pe}"
    drop_frac = float(jnp.mean(dropped.astype(jnp.float32)))
    assert 0.0 < drop_frac < 0.5, f"unexpected drop fraction {drop_frac}"

    print("KERNEL_OK")
</pallas_src>

<mosaic_0001>
module attributes {stable_mosaic.version = 11 : i64} {
  func.func @_pe_add_dropout_kernel(%arg0: i32, %arg1: memref<1xi32, #tpu.memory_space<smem>>, %arg2: memref<2x256xf32, #tpu.memory_space<vmem>>, %arg3: memref<1x256xf32, #tpu.memory_space<vmem>>, %arg4: memref<2x256xf32, #tpu.memory_space<vmem>>) attributes {dimension_semantics = [#tpu.dimension_semantics<parallel>], iteration_bounds = array<i64: 1>, scalar_prefetch = 1 : i64, scratch_operands = 0 : i64, tpu.core_type = #tpu.core_type<tc>, window_params = [{transform_indices = @transform_0, window_bounds = array<i64: 2, 256>}, {transform_indices = @transform_1, window_bounds = array<i64: 1, 256>}, {transform_indices = @transform_2, window_bounds = array<i64: 2, 256>}]} {
    %c0 = arith.constant 0 : index
    %c0_0 = arith.constant 0 : index
    %0 = vector.load %arg2[%c0, %c0_0] : memref<2x256xf32, #tpu.memory_space<vmem>>, vector<2x256xf32>
    %c0_1 = arith.constant 0 : index
    %c0_2 = arith.constant 0 : index
    %1 = vector.load %arg3[%c0_1, %c0_2] : memref<1x256xf32, #tpu.memory_space<vmem>>, vector<1x256xf32>
    %2 = vector.broadcast %1 : vector<1x256xf32> to vector<2x256xf32>
    %3 = arith.addf %0, %2 : vector<2x256xf32>
    %c0_3 = arith.constant 0 : index
    %c0_4 = arith.constant 0 : index
    %4 = vector.load %arg4[%c0_3, %c0_4] : memref<2x256xf32, #tpu.memory_space<vmem>>, vector<2x256xf32>
    tpu.vector_store %arg4[%c0_3, %c0_4], %3 {strides = array<i32>} : memref<2x256xf32, #tpu.memory_space<vmem>>, vector<2x256xf32>,
    return
  }
  func.func @transform_0(%arg0: i32, %arg1: memref<1xi32, #tpu.memory_space<smem>>) -> (i32, i32) {
    %c0_i32 = arith.constant 0 : i32
    %c0_i32_0 = arith.constant 0 : i32
    return %c0_i32, %arg0 : i32, i32
  }
  func.func @transform_1(%arg0: i32, %arg1: memref<1xi32, #tpu.memory_space<smem>>) -> (i32, i32) {
    %c0_i32 = arith.constant 0 : i32
    %c0_i32_0 = arith.constant 0 : i32
    return %c0_i32, %arg0 : i32, i32
  }
  func.func @transform_2(%arg0: i32, %arg1: memref<1xi32, #tpu.memory_space<smem>>) -> (i32, i32) {
    %c0_i32 = arith.constant 0 : i32
    %c0_i32_0 = arith.constant 0 : i32
    return %c0_i32, %arg0 : i32, i32
  }
}

</mosaic_0001>

<bundles_post_ra>
// kernel: tpu_custom_call.1
= control target key start
LH: loop header
LB: loop body
LE: loop exit
PB: predicated region body
PF: predicated region fallthrough
CT: control target
= control target key end

     0   :  { %9 = vsyncpa [#allocation5], 0  ;;  %s142_s0 = inlined_call_operand.<no memory space> [shape: s32[1], index: 0, kind: input, shape index: {}]   ;;  %s143_s1 = inlined_call_operand.hbm [shape: f32[2,256], index: 1, kind: input, shape index: {}]   ;;  %s144_s2 = inlined_call_operand.vmem [shape: f32[1,256], index: 2, kind: input, shape index: {}]   ;;  %s145_s3 = inlined_call_operand.hbm [shape: f32[2,256], index: 3, kind: output, shape index: {}]  }
   0x1   :  { %10 = vsyncpa [#allocation6], 0  ;;  %s110_s12 = smov [#allocation4]  }
   0x2   :  { %s17_s13 = sshll.u32 %s110_s12, 4  ;;  %s18_s13 = int_to_ptr.vmem [resolvable:$true] %s17_s13 }
   0x3   :  { %s74_s14 = scalar_lea.vmem %s18_s13, 64  ;;  %p79_p1 = scmp.lt.s32.totalorder %s18_s13, %s18_s13 }
   0x4   :  { %p75_p0 = scmp.ne.s32.totalorder %s18_s13, %s74_s14  ;;  %p80_p2 = scmp.lt.s32.totalorder %s74_s14, %s74_s14 }
   0x6   :  { %p81_p3 = por %p80_p2, %p79_p1 }
   0x8   :  { %p82_p4 = pnand %p81_p3, %p75_p0 }
   0xa   :  { %85 = shalt.err (!%p82_p4)
}
   0xb   :  { %20 = dma.hbm_to_vmem [thread:$0]  %s143_s1, 64, %s18_s13, [#allocation5]  }
   0xc   :  { %106 = dma.done.wait [#allocation5], 64  }
   0xd   :  { %107 = vsyncadd [#allocation5], 4294967232  ;;  %v29_v0 = vlaneseq  ;;  %v111_v1 = vmov 1983009808   ;;  %v27_v7 = vld [vmem:[%s144_s2] sm:$0x3] }
   0xe   :  { %v39_v2 = vunpack.c.l.s4 %v111_v1  ;;  %v26_v12 = vld [vmem:[#allocation4] sm:$0xf]  ;;  %s112_s18 = smov [#allocation7]  }
   0xf   :  { %v30_v3 = vshrl.u32 %v29_v0, 7  ;;  %s54_s1 = sshll.u32 %s112_s18, 4  ;;  %s55_s1 = int_to_ptr.vmem [resolvable:$true] %s54_s1 }
  0x10   :  { %v40_v6 = vunpack.c.0.s8 %v39_v2  ;;  %s86_s19 = scalar_lea.vmem %s55_s1, 64  ;;  %p91_p6 = scmp.lt.s32.totalorder %s55_s1, %s55_s1 }
  0x11   :  { %v31_v4 = vsub.s32 0, %v30_v3  ;;  %v35_v5 = vsub.s32 1, %v30_v3  ;;  %p87_p5 = scmp.ne.s32.totalorder %s55_s1, %s86_s19  ;;  %p92_p7 = scmp.lt.s32.totalorder %s86_s19, %s86_s19 }
  0x12   :  { %v43_v10 = vsub.s32 %v40_v6, %v30_v3 }
  0x13   :  { %v32_v8 = vrot.slane %v27_v7, %v31_v4  ;;  %v36_v9 = vrot.slane %v27_v7, %v35_v5  ;;  %p93_p8 = por %p92_p7, %p91_p6 }
  0x15   :  { %v37_v11 = vcombine.low %v32_v8, %v36_v9  ;;  %p94_p9 = pnand %p93_p8, %p87_p5 }
  0x17   :  { %v44_v13 = vrot.slane %v37_v11, %v43_v10 }
  0x19   :  { %v46_v14 = vadd.f32 %v44_v13, %v26_v12 }
  0x1b   :  { %47 = vst [vmem:[#allocation7] sm:$0xf] %v46_v14 }
  0x1c   :  { %97 = shalt.err (!%p94_p9)
}
  0x1d   :  { %57 = dma.vmem_to_hbm [thread:$0]  %s55_s1, 64, %s145_s3, [#allocation6]  }
  0x1e   :  { %108 = dma.done.wait [#allocation6], 64  }
  0x1f   :  { %109 = vsyncadd [#allocation6], 4294967232 }
  0x20   :  { %61 = vsyncpa [#allocation5], 1 }
  0x21   :  { %62 = vsyncpa [#allocation6], 1 }

</bundles_post_ra>
